<compile_context>
chip_gen: v6e
topology: v6e:2x2x1
jax: 0.10.0
libtpu: 0.0.40
codegen_flags: <defaults>
</compile_context>

<pallas_src>
import functools

import numpy as np
import jax
import jax.numpy as jnp
from jax.experimental import pallas as pl
from jax.experimental.pallas import tpu as pltpu


def _basic_block_kernel(xs_ref, pat_ref, w1_ref, bsum_ref, w3a_ref, b3a_ref,
                        w3b_ref, o_ref, *, ho, wo):
    hwo = ho * wo
    cout = o_ref.shape[-1]

    xs = xs_ref[0]                    # (HWo, Cin)    bf16
    pat = pat_ref[0]                  # (HWo, 9*Cin)  bf16

    # conv3a: 3x3 stride-2 pad-1 as a single big-K GEMM over im2col patches, + bias, ReLU.
    mid = jnp.dot(pat, w3a_ref[...], preferred_element_type=jnp.float32)
    mid = jnp.maximum(mid + b3a_ref[...], 0.0)        # (HWo, Cout) f32

    # Shortcut 1x1 stride-2 conv; seed the accumulator with it plus the folded bias b1+b3b.
    acc = jnp.dot(xs, w1_ref[...], preferred_element_type=jnp.float32) + bsum_ref[...]

    # conv3b: 3x3 stride-1 pad-1.  Tap (dh, dw) = mid shifted by s = dh*Wo + dw rows of the
    # flattened (HWo, Cout) layout (zero fill at the ends; wrap across row boundaries is
    # killed by the column mask), then one (HWo, Cout) @ (Cout, Cout) MXU matmul per tap.
    zeros_blk = jnp.zeros((wo + 1, cout), jnp.float32)
    col = jax.lax.broadcasted_iota(jnp.int32, (hwo, cout), 0) % wo
    mask_l = col >= 1            # valid output columns when dw = -1
    mask_r = col < (wo - 1)      # valid output columns when dw = +1

    for kh in range(3):
        for kw in range(3):
            dh, dw = kh - 1, kw - 1
            s = dh * wo + dw
            if s == 0:
                tap = mid
            elif s > 0:
                tap = jnp.concatenate([mid[s:], zeros_blk[:s]], axis=0)
            else:
                tap = jnp.concatenate([zeros_blk[:-s], mid[:s]], axis=0)
            if dw == -1:
                tap = jnp.where(mask_l, tap, 0.0)
            elif dw == 1:
                tap = jnp.where(mask_r, tap, 0.0)
            acc = acc + jnp.dot(tap.astype(jnp.bfloat16), w3b_ref[kh * 3 + kw],
                                preferred_element_type=jnp.float32)

    o_ref[0] = jnp.maximum(acc, 0.0).astype(o_ref.dtype)


def resnet18_basic_block_2(x_nchw, w1_t, b1_t, w3a_t, b3a_t, w3b_t, b3b_t):
    N, Cin, H, W = x_nchw.shape
    Cout = w1_t.shape[0]
    Ho, Wo = H // 2, W // 2
    HWo = Ho * Wo

    # ---- plain-JAX glue: NCHW -> NHWC, stride-2 subsample (1x1 path), im2col for conv3a ----
    x = jnp.transpose(x_nchw, (0, 2, 3, 1))                                 # NHWC
    xs = x[:, ::2, ::2, :].reshape(N, HWo, Cin).astype(jnp.bfloat16)        # 1x1 s2 path
    xpad = jnp.pad(x, ((0, 0), (1, 1), (1, 1), (0, 0)))
    pats = [xpad[:, kh:kh + 2 * Ho:2, kw:kw + 2 * Wo:2, :]
            for kh in range(3) for kw in range(3)]
    patches = jnp.concatenate(pats, axis=-1).reshape(N, HWo, 9 * Cin).astype(jnp.bfloat16)

    # weights rearranged for NHWC GEMMs (PyTorch OIHW), cast to bf16 for the MXU.
    w1 = jnp.transpose(w1_t[:, :, 0, 0], (1, 0)).astype(jnp.bfloat16)              # (Cin, Cout)
    w3a = jnp.transpose(w3a_t, (2, 3, 1, 0)).reshape(9 * Cin, Cout).astype(jnp.bfloat16)
    w3b = jnp.transpose(w3b_t, (2, 3, 1, 0)).reshape(9, Cout, Cout).astype(jnp.bfloat16)
    b3a = b3a_t.reshape(1, Cout).astype(jnp.float32)
    bsum = (b1_t + b3b_t).reshape(1, Cout).astype(jnp.float32)                     # b1 + b3b

    kernel = functools.partial(_basic_block_kernel, ho=Ho, wo=Wo)

    out_flat = pl.pallas_call(
        kernel,
        out_shape=jax.ShapeDtypeStruct((N, HWo, Cout), jnp.float32),
        grid_spec=pltpu.PrefetchScalarGridSpec(
            num_scalar_prefetch=0,
            grid=(N,),
            in_specs=[
                pl.BlockSpec((1, HWo, Cin), lambda b: (b, 0, 0)),        # xs
                pl.BlockSpec((1, HWo, 9 * Cin), lambda b: (b, 0, 0)),    # patches
                pl.BlockSpec((Cin, Cout), lambda b: (0, 0)),             # w1
                pl.BlockSpec((1, Cout), lambda b: (0, 0)),               # b1 + b3b
                pl.BlockSpec((9 * Cin, Cout), lambda b: (0, 0)),         # w3a
                pl.BlockSpec((1, Cout), lambda b: (0, 0)),               # b3a
                pl.BlockSpec((9, Cout, Cout), lambda b: (0, 0, 0)),      # w3b
            ],
            out_specs=pl.BlockSpec((1, HWo, Cout), lambda b: (b, 0, 0)),
        ),
        compiler_params=pltpu.CompilerParams(dimension_semantics=("parallel",)),
    )(xs, patches, w1, bsum, w3a, b3a, w3b)

    out = out_flat.reshape(N, Ho, Wo, Cout)
    return jnp.transpose(out, (0, 3, 1, 2))                              # back to NCHW


# ---------------- pure-JAX reference (matches the PyTorch forward, f32) ----------------
def _conv_ref(x, w, b, stride, pad):
    out = jax.lax.conv_general_dilated(
        x, w, window_strides=(stride, stride),
        padding=((pad, pad), (pad, pad)),
        dimension_numbers=("NCHW", "OIHW", "NCHW"))
    return out + b.reshape(1, -1, 1, 1)


def _ref_forward(x, w1, b1, w3a, b3a, w3b, b3b):
    out1 = _conv_ref(x, w1, b1, 2, 0)
    mid = jax.nn.relu(_conv_ref(x, w3a, b3a, 2, 1))
    out2 = _conv_ref(mid, w3b, b3b, 1, 1)
    return jax.nn.relu(out1 + out2)


if __name__ == "__main__":
    N, Cin, Cout, H, W = 2, 4, 8, 16, 16
    key = jax.random.PRNGKey(0)
    keys = jax.random.split(key, 7)

    x_nchw = jax.random.normal(keys[0], (N, Cin, H, W), jnp.float32)
    # deterministic synthetic parameters (PyTorch module shapes, bias=True by default)
    w1_t  = jax.random.normal(keys[1], (Cout, Cin, 1, 1), jnp.float32) * 0.2
    b1_t  = jax.random.normal(keys[2], (Cout,), jnp.float32) * 0.1
    w3a_t = jax.random.normal(keys[3], (Cout, Cin, 3, 3), jnp.float32) * 0.2
    b3a_t = jax.random.normal(keys[4], (Cout,), jnp.float32) * 0.1
    w3b_t = jax.random.normal(keys[5], (Cout, Cout, 3, 3), jnp.float32) * 0.2
    b3b_t = jax.random.normal(keys[6], (Cout,), jnp.float32) * 0.1

    out = resnet18_basic_block_2(x_nchw, w1_t, b1_t, w3a_t, b3a_t, w3b_t, b3b_t)
    out = jax.block_until_ready(out)

    ref = _ref_forward(x_nchw, w1_t, b1_t, w3a_t, b3a_t, w3b_t, b3b_t)
    # tolerance relaxed vs the previous f32 version: GEMM operands are bf16 (f32 accumulate)
    np.testing.assert_allclose(np.asarray(out), np.asarray(ref), rtol=3e-2, atol=5e-2)
    print("KERNEL_OK")
</pallas_src>

<mosaic_0001>
module attributes {stable_mosaic.version = 11 : i64} {
  func.func @_basic_block_kernel(%arg0: i32, %arg1: memref<1x64x4xbf16, #tpu.memory_space<vmem>>, %arg2: memref<1x64x36xbf16, #tpu.memory_space<vmem>>, %arg3: memref<4x8xbf16, #tpu.memory_space<vmem>>, %arg4: memref<1x8xf32, #tpu.memory_space<vmem>>, %arg5: memref<36x8xbf16, #tpu.memory_space<vmem>>, %arg6: memref<1x8xf32, #tpu.memory_space<vmem>>, %arg7: memref<9x8x8xbf16, #tpu.memory_space<vmem>>, %arg8: memref<1x64x8xf32, #tpu.memory_space<vmem>>) attributes {dimension_semantics = [#tpu.dimension_semantics<parallel>], iteration_bounds = array<i64: 2>, scalar_prefetch = 0 : i64, scratch_operands = 0 : i64, tpu.core_type = #tpu.core_type<tc>, window_params = [{transform_indices = @transform_0, window_bounds = array<i64: 1, 64, 4>}, {transform_indices = @transform_1, window_bounds = array<i64: 1, 64, 36>}, {pipeline_mode = #tpu.pipeline_mode<synchronous>, transform_indices = @transform_2, window_bounds = array<i64: 4, 8>}, {pipeline_mode = #tpu.pipeline_mode<synchronous>, transform_indices = @transform_3, window_bounds = array<i64: 1, 8>}, {pipeline_mode = #tpu.pipeline_mode<synchronous>, transform_indices = @transform_4, window_bounds = array<i64: 36, 8>}, {pipeline_mode = #tpu.pipeline_mode<synchronous>, transform_indices = @transform_5, window_bounds = array<i64: 1, 8>}, {pipeline_mode = #tpu.pipeline_mode<synchronous>, transform_indices = @transform_6, window_bounds = array<i64: 9, 8, 8>}, {transform_indices = @transform_7, window_bounds = array<i64: 1, 64, 8>}]} {
    %c0 = arith.constant 0 : index
    %c0_0 = arith.constant 0 : index
    %c0_1 = arith.constant 0 : index
    %0 = vector.load %arg1[%c0, %c0_0, %c0_1] : memref<1x64x4xbf16, #tpu.memory_space<vmem>>, vector<1x64x4xbf16>
    %1 = vector.shape_cast %0 : vector<1x64x4xbf16> to vector<64x4xbf16>
    %c0_2 = arith.constant 0 : index
    %c0_3 = arith.constant 0 : index
    %c0_4 = arith.constant 0 : index
    %2 = vector.load %arg2[%c0_2, %c0_3, %c0_4] : memref<1x64x36xbf16, #tpu.memory_space<vmem>>, vector<1x64x36xbf16>
    %3 = vector.shape_cast %2 : vector<1x64x36xbf16> to vector<64x36xbf16>
    %c0_5 = arith.constant 0 : index
    %c0_6 = arith.constant 0 : index
    %4 = vector.load %arg5[%c0_5, %c0_6] : memref<36x8xbf16, #tpu.memory_space<vmem>>, vector<36x8xbf16>
    %cst = arith.constant dense<0.000000e+00> : vector<64x8xf32>
    %5 = tpu.matmul %3, %4, %cst {dimension_numbers = #tpu.dot_dimension_numbers<[1], [0], [0], [1], [0, 0, 1, 1], [], []>} : vector<64x36xbf16>, vector<36x8xbf16>, vector<64x8xf32> -> vector<64x8xf32>
    %c0_7 = arith.constant 0 : index
    %c0_8 = arith.constant 0 : index
    %6 = vector.load %arg6[%c0_7, %c0_8] : memref<1x8xf32, #tpu.memory_space<vmem>>, vector<1x8xf32>
    %7 = vector.broadcast %6 : vector<1x8xf32> to vector<64x8xf32>
    %8 = arith.addf %5, %7 : vector<64x8xf32>
    %cst_9 = arith.constant 0.000000e+00 : f32
    %9 = vector.broadcast %cst_9 : f32 to vector<64x8xf32>
    %10 = arith.maximumf %8, %9 : vector<64x8xf32>
    %c0_10 = arith.constant 0 : index
    %c0_11 = arith.constant 0 : index
    %11 = vector.load %arg3[%c0_10, %c0_11] : memref<4x8xbf16, #tpu.memory_space<vmem>>, vector<4x8xbf16>
    %cst_12 = arith.constant dense<0.000000e+00> : vector<64x8xf32>
    %12 = tpu.matmul %1, %11, %cst_12 {dimension_numbers = #tpu.dot_dimension_numbers<[1], [0], [0], [1], [0, 0, 1, 1], [], []>} : vector<64x4xbf16>, vector<4x8xbf16>, vector<64x8xf32> -> vector<64x8xf32>
    %c0_13 = arith.constant 0 : index
    %c0_14 = arith.constant 0 : index
    %13 = vector.load %arg4[%c0_13, %c0_14] : memref<1x8xf32, #tpu.memory_space<vmem>>, vector<1x8xf32>
    %14 = vector.broadcast %13 : vector<1x8xf32> to vector<64x8xf32>
    %15 = arith.addf %12, %14 : vector<64x8xf32>
    %cst_15 = arith.constant 0.000000e+00 : f32
    %16 = vector.broadcast %cst_15 : f32 to vector<9x8xf32>
    %17 = tpu.iota {dimensions = array<i32: 0>} : vector<64x8xi32>
    %c8_i32 = arith.constant 8 : i32
    %c0_i32 = arith.constant 0 : i32
    %18 = arith.cmpi eq, %c8_i32, %c0_i32 : i32
    %c1_i32 = arith.constant 1 : i32
    %19 = arith.select %18, %c1_i32, %c8_i32 : i32
    %20 = vector.broadcast %19 : i32 to vector<64x8xi32>
    %21 = arith.remsi %17, %20 : vector<64x8xi32>
    %c0_i32_16 = arith.constant 0 : i32
    %22 = vector.broadcast %c0_i32_16 : i32 to vector<64x8xi32>
    %23 = arith.cmpi ne, %21, %22 : vector<64x8xi32>
    %c0_i32_17 = arith.constant 0 : i32
    %24 = vector.broadcast %c0_i32_17 : i32 to vector<64x8xi32>
    %25 = arith.cmpi slt, %21, %24 : vector<64x8xi32>
    %c0_i32_18 = arith.constant 0 : i32
    %26 = arith.cmpi slt, %19, %c0_i32_18 : i32
    %27 = vector.broadcast %26 : i1 to vector<64x8xi1>
    %28 = vector.broadcast %27 : vector<64x8xi1> to vector<64x8xi1>
    %29 = arith.xori %25, %28 : vector<64x8xi1>
    %30 = arith.andi %29, %23 : vector<64x8xi1>
    %31 = vector.broadcast %19 : i32 to vector<64x8xi32>
    %32 = arith.addi %21, %31 : vector<64x8xi32>
    %33 = arith.select %30, %32, %21 : vector<64x8xi1>, vector<64x8xi32>
    %c1_i32_19 = arith.constant 1 : i32
    %34 = vector.broadcast %c1_i32_19 : i32 to vector<64x8xi32>
    %35 = arith.cmpi sge, %33, %34 : vector<64x8xi32>
    %c7_i32 = arith.constant 7 : i32
    %36 = vector.broadcast %c7_i32 : i32 to vector<64x8xi32>
    %37 = arith.cmpi slt, %33, %36 : vector<64x8xi32>
    %38 = vector.extract_strided_slice %10 {offsets = [0, 0], sizes = [55, 8], strides = [1, 1]} : vector<64x8xf32> to vector<55x8xf32>
    %39 = tpu.concatenate %16, %38 in 0 : vector<9x8xf32>, vector<55x8xf32> -> vector<64x8xf32>
    %cst_20 = arith.constant 0.000000e+00 : f32
    %40 = vector.broadcast %cst_20 : f32 to vector<64x8xf32>
    %41 = arith.select %35, %39, %40 : vector<64x8xi1>, vector<64x8xf32>
    %42 = arith.truncf %41 : vector<64x8xf32> to vector<64x8xbf16>
    %c0_21 = arith.constant 0 : index
    %c0_22 = arith.constant 0 : index
    %c0_23 = arith.constant 0 : index
    %43 = vector.load %arg7[%c0_21, %c0_22, %c0_23] : memref<9x8x8xbf16, #tpu.memory_space<vmem>>, vector<1x8x8xbf16>
    %44 = vector.shape_cast %43 : vector<1x8x8xbf16> to vector<8x8xbf16>
    %cst_24 = arith.constant dense<0.000000e+00> : vector<64x8xf32>
    %45 = tpu.matmul %42, %44, %cst_24 {dimension_numbers = #tpu.dot_dimension_numbers<[1], [0], [0], [1], [0, 0, 1, 1], [], []>} : vector<64x8xbf16>, vector<8x8xbf16>, vector<64x8xf32> -> vector<64x8xf32>
    %46 = arith.addf %15, %45 : vector<64x8xf32>
    %47 = vector.extract_strided_slice %16 {offsets = [0, 0], sizes = [8, 8], strides = [1, 1]} : vector<9x8xf32> to vector<8x8xf32>
    %48 = vector.extract_strided_slice %10 {offsets = [0, 0], sizes = [56, 8], strides = [1, 1]} : vector<64x8xf32> to vector<56x8xf32>
    %49 = tpu.concatenate %47, %48 in 0 : vector<8x8xf32>, vector<56x8xf32> -> vector<64x8xf32>
    %50 = arith.truncf %49 : vector<64x8xf32> to vector<64x8xbf16>
    %c1 = arith.constant 1 : index
    %c0_25 = arith.constant 0 : index
    %c0_26 = arith.constant 0 : index
    %51 = vector.load %arg7[%c1, %c0_25, %c0_26] : memref<9x8x8xbf16, #tpu.memory_space<vmem>>, vector<1x8x8xbf16>
    %52 = vector.shape_cast %51 : vector<1x8x8xbf16> to vector<8x8xbf16>
    %cst_27 = arith.constant dense<0.000000e+00> : vector<64x8xf32>
    %53 = tpu.matmul %50, %52, %cst_27 {dimension_numbers = #tpu.dot_dimension_numbers<[1], [0], [0], [1], [0, 0, 1, 1], [], []>} : vector<64x8xbf16>, vector<8x8xbf16>, vector<64x8xf32> -> vector<64x8xf32>
    %54 = arith.addf %46, %53 : vector<64x8xf32>
    %55 = vector.extract_strided_slice %16 {offsets = [0, 0], sizes = [7, 8], strides = [1, 1]} : vector<9x8xf32> to vector<7x8xf32>
    %56 = vector.extract_strided_slice %10 {offsets = [0, 0], sizes = [57, 8], strides = [1, 1]} : vector<64x8xf32> to vector<57x8xf32>
    %57 = tpu.concatenate %55, %56 in 0 : vector<7x8xf32>, vector<57x8xf32> -> vector<64x8xf32>
    %cst_28 = arith.constant 0.000000e+00 : f32
    %58 = vector.broadcast %cst_28 : f32 to vector<64x8xf32>
    %59 = arith.select %37, %57, %58 : vector<64x8xi1>, vector<64x8xf32>
    %60 = arith.truncf %59 : vector<64x8xf32> to vector<64x8xbf16>
    %c2 = arith.constant 2 : index
    %c0_29 = arith.constant 0 : index
    %c0_30 = arith.constant 0 : index
    %61 = vector.load %arg7[%c2, %c0_29, %c0_30] : memref<9x8x8xbf16, #tpu.memory_space<vmem>>, vector<1x8x8xbf16>
    %62 = vector.shape_cast %61 : vector<1x8x8xbf16> to vector<8x8xbf16>
    %cst_31 = arith.constant dense<0.000000e+00> : vector<64x8xf32>
    %63 = tpu.matmul %60, %62, %cst_31 {dimension_numbers = #tpu.dot_dimension_numbers<[1], [0], [0], [1], [0, 0, 1, 1], [], []>} : vector<64x8xbf16>, vector<8x8xbf16>, vector<64x8xf32> -> vector<64x8xf32>
    %64 = arith.addf %54, %63 : vector<64x8xf32>
    %65 = vector.extract_strided_slice %16 {offsets = [0, 0], sizes = [1, 8], strides = [1, 1]} : vector<9x8xf32> to vector<1x8xf32>
    %66 = vector.extract_strided_slice %10 {offsets = [0, 0], sizes = [63, 8], strides = [1, 1]} : vector<64x8xf32> to vector<63x8xf32>
    %67 = tpu.concatenate %65, %66 in 0 : vector<1x8xf32>, vector<63x8xf32> -> vector<64x8xf32>
    %cst_32 = arith.constant 0.000000e+00 : f32
    %68 = vector.broadcast %cst_32 : f32 to vector<64x8xf32>
    %69 = arith.select %35, %67, %68 : vector<64x8xi1>, vector<64x8xf32>
    %70 = arith.truncf %69 : vector<64x8xf32> to vector<64x8xbf16>
    %c3 = arith.constant 3 : index
    %c0_33 = arith.constant 0 : index
    %c0_34 = arith.constant 0 : index
    %71 = vector.load %arg7[%c3, %c0_33, %c0_34] : memref<9x8x8xbf16, #tpu.memory_space<vmem>>, vector<1x8x8xbf16>
    %72 = vector.shape_cast %71 : vector<1x8x8xbf16> to vector<8x8xbf16>
    %cst_35 = arith.constant dense<0.000000e+00> : vector<64x8xf32>
    %73 = tpu.matmul %70, %72, %cst_35 {dimension_numbers = #tpu.dot_dimension_numbers<[1], [0], [0], [1], [0, 0, 1, 1], [], []>} : vector<64x8xbf16>, vector<8x8xbf16>, vector<64x8xf32> -> vector<64x8xf32>
    %74 = arith.addf %64, %73 : vector<64x8xf32>
    %75 = arith.truncf %10 : vector<64x8xf32> to vector<64x8xbf16>
    %c4 = arith.constant 4 : index
    %c0_36 = arith.constant 0 : index
    %c0_37 = arith.constant 0 : index
    %76 = vector.load %arg7[%c4, %c0_36, %c0_37] : memref<9x8x8xbf16, #tpu.memory_space<vmem>>, vector<1x8x8xbf16>
    %77 = vector.shape_cast %76 : vector<1x8x8xbf16> to vector<8x8xbf16>
    %cst_38 = arith.constant dense<0.000000e+00> : vector<64x8xf32>
    %78 = tpu.matmul %75, %77, %cst_38 {dimension_numbers = #tpu.dot_dimension_numbers<[1], [0], [0], [1], [0, 0, 1, 1], [], []>} : vector<64x8xbf16>, vector<8x8xbf16>, vector<64x8xf32> -> vector<64x8xf32>
    %79 = arith.addf %74, %78 : vector<64x8xf32>
    %80 = vector.extract_strided_slice %10 {offsets = [1, 0], sizes = [63, 8], strides = [1, 1]} : vector<64x8xf32> to vector<63x8xf32>
    %81 = vector.extract_strided_slice %16 {offsets = [0, 0], sizes = [1, 8], strides = [1, 1]} : vector<9x8xf32> to vector<1x8xf32>
    %82 = tpu.concatenate %80, %81 in 0 : vector<63x8xf32>, vector<1x8xf32> -> vector<64x8xf32>
    %cst_39 = arith.constant 0.000000e+00 : f32
    %83 = vector.broadcast %cst_39 : f32 to vector<64x8xf32>
    %84 = arith.select %37, %82, %83 : vector<64x8xi1>, vector<64x8xf32>
    %85 = arith.truncf %84 : vector<64x8xf32> to vector<64x8xbf16>
    %c5 = arith.constant 5 : index
    %c0_40 = arith.constant 0 : index
    %c0_41 = arith.constant 0 : index
    %86 = vector.load %arg7[%c5, %c0_40, %c0_41] : memref<9x8x8xbf16, #tpu.memory_space<vmem>>, vector<1x8x8xbf16>
    %87 = vector.shape_cast %86 : vector<1x8x8xbf16> to vector<8x8xbf16>
    %cst_42 = arith.constant dense<0.000000e+00> : vector<64x8xf32>
    %88 = tpu.matmul %85, %87, %cst_42 {dimension_numbers = #tpu.dot_dimension_numbers<[1], [0], [0], [1], [0, 0, 1, 1], [], []>} : vector<64x8xbf16>, vector<8x8xbf16>, vector<64x8xf32> -> vector<64x8xf32>
    %89 = arith.addf %79, %88 : vector<64x8xf32>
    %90 = vector.extract_strided_slice %10 {offsets = [7, 0], sizes = [57, 8], strides = [1, 1]} : vector<64x8xf32> to vector<57x8xf32>
    %91 = vector.extract_strided_slice %16 {offsets = [0, 0], sizes = [7, 8], strides = [1, 1]} : vector<9x8xf32> to vector<7x8xf32>
    %92 = tpu.concatenate %90, %91 in 0 : vector<57x8xf32>, vector<7x8xf32> -> vector<64x8xf32>
    %cst_43 = arith.constant 0.000000e+00 : f32
    %93 = vector.broadcast %cst_43 : f32 to vector<64x8xf32>
    %94 = arith.select %35, %92, %93 : vector<64x8xi1>, vector<64x8xf32>
    %95 = arith.truncf %94 : vector<64x8xf32> to vector<64x8xbf16>
    %c6 = arith.constant 6 : index
    %c0_44 = arith.constant 0 : index
    %c0_45 = arith.constant 0 : index
    %96 = vector.load %arg7[%c6, %c0_44, %c0_45] : memref<9x8x8xbf16, #tpu.memory_space<vmem>>, vector<1x8x8xbf16>
    %97 = vector.shape_cast %96 : vector<1x8x8xbf16> to vector<8x8xbf16>
    %cst_46 = arith.constant dense<0.000000e+00> : vector<64x8xf32>
    %98 = tpu.matmul %95, %97, %cst_46 {dimension_numbers = #tpu.dot_dimension_numbers<[1], [0], [0], [1], [0, 0, 1, 1], [], []>} : vector<64x8xbf16>, vector<8x8xbf16>, vector<64x8xf32> -> vector<64x8xf32>
    %99 = arith.addf %89, %98 : vector<64x8xf32>
    %100 = vector.extract_strided_slice %10 {offsets = [8, 0], sizes = [56, 8], strides = [1, 1]} : vector<64x8xf32> to vector<56x8xf32>
    %101 = vector.extract_strided_slice %16 {offsets = [0, 0], sizes = [8, 8], strides = [1, 1]} : vector<9x8xf32> to vector<8x8xf32>
    %102 = tpu.concatenate %100, %101 in 0 : vector<56x8xf32>, vector<8x8xf32> -> vector<64x8xf32>
    %103 = arith.truncf %102 : vector<64x8xf32> to vector<64x8xbf16>
    %c7 = arith.constant 7 : index
    %c0_47 = arith.constant 0 : index
    %c0_48 = arith.constant 0 : index
    %104 = vector.load %arg7[%c7, %c0_47, %c0_48] : memref<9x8x8xbf16, #tpu.memory_space<vmem>>, vector<1x8x8xbf16>
    %105 = vector.shape_cast %104 : vector<1x8x8xbf16> to vector<8x8xbf16>
    %cst_49 = arith.constant dense<0.000000e+00> : vector<64x8xf32>
    %106 = tpu.matmul %103, %105, %cst_49 {dimension_numbers = #tpu.dot_dimension_numbers<[1], [0], [0], [1], [0, 0, 1, 1], [], []>} : vector<64x8xbf16>, vector<8x8xbf16>, vector<64x8xf32> -> vector<64x8xf32>
    %107 = arith.addf %99, %106 : vector<64x8xf32>
    %108 = vector.extract_strided_slice %10 {offsets = [9, 0], sizes = [55, 8], strides = [1, 1]} : vector<64x8xf32> to vector<55x8xf32>
    %109 = tpu.concatenate %108, %16 in 0 : vector<55x8xf32>, vector<9x8xf32> -> vector<64x8xf32>
    %cst_50 = arith.constant 0.000000e+00 : f32
    %110 = vector.broadcast %cst_50 : f32 to vector<64x8xf32>
    %111 = arith.select %37, %109, %110 : vector<64x8xi1>, vector<64x8xf32>
    %112 = arith.truncf %111 : vector<64x8xf32> to vector<64x8xbf16>
    %c8 = arith.constant 8 : index
    %c0_51 = arith.constant 0 : index
    %c0_52 = arith.constant 0 : index
    %113 = vector.load %arg7[%c8, %c0_51, %c0_52] : memref<9x8x8xbf16, #tpu.memory_space<vmem>>, vector<1x8x8xbf16>
    %114 = vector.shape_cast %113 : vector<1x8x8xbf16> to vector<8x8xbf16>
    %cst_53 = arith.constant dense<0.000000e+00> : vector<64x8xf32>
    %115 = tpu.matmul %112, %114, %cst_53 {dimension_numbers = #tpu.dot_dimension_numbers<[1], [0], [0], [1], [0, 0, 1, 1], [], []>} : vector<64x8xbf16>, vector<8x8xbf16>, vector<64x8xf32> -> vector<64x8xf32>
    %116 = arith.addf %107, %115 : vector<64x8xf32>
    %cst_54 = arith.constant 0.000000e+00 : f32
    %117 = vector.broadcast %cst_54 : f32 to vector<64x8xf32>
    %118 = arith.maximumf %116, %117 : vector<64x8xf32>
    %c0_55 = arith.constant 0 : index
    %c0_56 = arith.constant 0 : index
    %c0_57 = arith.constant 0 : index
    %119 = vector.load %arg8[%c0_55, %c0_56, %c0_57] : memref<1x64x8xf32, #tpu.memory_space<vmem>>, vector<1x64x8xf32>
    %120 = vector.shape_cast %119 : vector<1x64x8xf32> to vector<64x8xf32>
    %121 = vector.shape_cast %118 : vector<64x8xf32> to vector<1x64x8xf32>
    tpu.vector_store %arg8[%c0_55, %c0_56, %c0_57], %121 {strides = array<i32>} : memref<1x64x8xf32, #tpu.memory_space<vmem>>, vector<1x64x8xf32>,
    return
  }
  func.func @transform_0(%arg0: i32) -> (i32, i32, i32) {
    %c0_i32 = arith.constant 0 : i32
    %c0_i32_0 = arith.constant 0 : i32
    %c0_i32_1 = arith.constant 0 : i32
    return %arg0, %c0_i32, %c0_i32_0 : i32, i32, i32
  }
  func.func @transform_1(%arg0: i32) -> (i32, i32, i32) {
    %c0_i32 = arith.constant 0 : i32
    %c0_i32_0 = arith.constant 0 : i32
    %c0_i32_1 = arith.constant 0 : i32
    return %arg0, %c0_i32, %c0_i32_0 : i32, i32, i32
  }
  func.func @transform_2(%arg0: i32) -> (i32, i32) {
    %c0_i32 = arith.constant 0 : i32
    %c0_i32_0 = arith.constant 0 : i32
    %c0_i32_1 = arith.constant 0 : i32
    return %c0_i32, %c0_i32_0 : i32, i32
  }
  func.func @transform_3(%arg0: i32) -> (i32, i32) {
    %c0_i32 = arith.constant 0 : i32
    %c0_i32_0 = arith.constant 0 : i32
    %c0_i32_1 = arith.constant 0 : i32
    return %c0_i32, %c0_i32_0 : i32, i32
  }
  func.func @transform_4(%arg0: i32) -> (i32, i32) {
    %c0_i32 = arith.constant 0 : i32
    %c0_i32_0 = arith.constant 0 : i32
    %c0_i32_1 = arith.constant 0 : i32
    return %c0_i32, %c0_i32_0 : i32, i32
  }
  func.func @transform_5(%arg0: i32) -> (i32, i32) {
    %c0_i32 = arith.constant 0 : i32
    %c0_i32_0 = arith.constant 0 : i32
    %c0_i32_1 = arith.constant 0 : i32
    return %c0_i32, %c0_i32_0 : i32, i32
  }
  func.func @transform_6(%arg0: i32) -> (i32, i32, i32) {
    %c0_i32 = arith.constant 0 : i32
    %c0_i32_0 = arith.constant 0 : i32
    %c0_i32_1 = arith.constant 0 : i32
    %c0_i32_2 = arith.constant 0 : i32
    return %c0_i32, %c0_i32_0, %c0_i32_1 : i32, i32, i32
  }
  func.func @transform_7(%arg0: i32) -> (i32, i32, i32) {
    %c0_i32 = arith.constant 0 : i32
    %c0_i32_0 = arith.constant 0 : i32
    %c0_i32_1 = arith.constant 0 : i32
    return %arg0, %c0_i32, %c0_i32_0 : i32, i32, i32
  }
}

</mosaic_0001>

<bundles_post_ra>
// kernel: tpu_custom_call.1
= control target key start
LH: loop header
LB: loop body
LE: loop exit
PB: predicated region body
PF: predicated region fallthrough
CT: control target
= control target key end

     0   :  { %s2041_s24 = smov 0   ;;  %s2649_s0 = inlined_call_operand.vmem [shape: bf16[2,64,4], index: 0, kind: input, shape index: {}]   ;;  %s2650_s1 = inlined_call_operand.vmem [shape: bf16[2,64,36], index: 1, kind: input, shape index: {}]   ;;  %s2651_s2 = inlined_call_operand.vmem [shape: bf16[4,8], index: 2, kind: input, shape index: {}]   ;;  %s2652_s3 = inlined_call_operand.vmem [shape: f32[1,8], index: 3, kind: input, shape index: {}]   ;;  %s2653_s4 = inlined_call_operand.vmem [shape: bf16[36,8], index: 4, kind: input, shape index: {}]   ;;  %s2654_s5 = inlined_call_operand.vmem [shape: f32[1,8], index: 5, kind: input, shape index: {}]   ;;  %s2655_s6 = inlined_call_operand.vmem [shape: bf16[9,8,8], index: 6, kind: input, shape index: {}]   ;;  %s2656_s7 = inlined_call_operand.vmem [shape: f32[2,64,8], index: 7, kind: output, shape index: {}]  }
   0x1 LB: > { %s1709_s25 = sadd.s32 4294967295, %s1998_s24   ;;  %p1713_p0 = scmp.ge.s32.totalorder %s1998_s24, 1  ;;  %s1998_s24 = sphi %s2041_s24, %s17_s24  }
   0x2   : > { %p247_p1 = scmp.lt.s32.totalorder %s1998_s24, 3 }
   0x4   : > { %p248_p2 = pnand %p1713_p0, %p247_p1 }
   0x6   : > { %251 = sbr.rel (%p248_p2) target bundleno = 509 (0x1fd), region = 48 }
   0xb   : > { %v1981_v0 = vld [vmem:[%s2653_s4 + $0x10] ss:$0 sps:$4 sm:$0x33]   ;;  %vm376_vm0 = vcmask 1041408   ;;  %v1982_v1 = vld [vmem:[%s2653_s4 + $0x8] sm:$0xff]   ;;  %p284_p3 = scmp.lt.s32.totalorder %s1709_s25, 1  ;;  %v562_v20 = vlaneseq }
   0xc   : > { %1961 = vmatprep.subr.msk.bf16.mxu0 %vm376_vm0, %v1981_v0  ;;  %v378_v2 = vsel %vm376_vm0, %v1981_v0, 0  ;;  %v453_v3 = vld [vmem:[%s2651_s2] sm:$0x3]  ;;  %vm363_vm1 = vcmask 293888   ;;  %vm481_vm2 = vcmask 31744   ;;  %vm2658_vm3 = vcmask 1043456  }
   0xd   : > { %1848 = vmatpush3.bf16.msra.mxu0 %v378_v2  ;;  %s2757_s25 = smov (!%p284_p3, %s1709_s25), 1  ;;  %v1983_v4 = vld [vmem:[%s2653_s4] sm:$0xff]   ;;  %1962 = vmatprep.subr.msk.bf16.mxu1 %vm376_vm0, %v453_v3  ;;  %v495_v5 = vsel %vm376_vm0, %v453_v3, 0  ;;  %v2087_v18 = vld [vmem:[%s2655_s6 + $0x8] sm:$0xf]  ;;  %v2095_v21 = vshrl.u32 %v562_v20, 7 }
   0xe   : > { %1849 = vmatprep.subr.bf16.mxu0 %v1982_v1  ;;  %s1787_s11 = sshll.u32 %s2757_s25, 5  ;;  %1862 = vmatpush3.bf16.msra.mxu1 %v495_v5  ;;  %v723_v14 = vld [vmem:[%s2655_s6] sm:$0xf]  ;;  %v1745_v16 = vld [vmem:[%s2655_s6 + $0x4] sm:$0xf]  ;;  %vm2657_vm4 = vcmask 1040384  }
   0xf   : > { %s293_s14 = scalar_lea.vmem %s2650_s1, %s1787_s11  ;;  %s288_s17 = scalar_lea.vmem %s2649_s0, %s1787_s11  ;;  %1963 = vmatprep.subr.msk.bf16.mxu1 %vm2658_vm3, %v723_v14  ;;  %v739_v15 = vsel %vm2658_vm3, %v723_v14, 0  ;;  %v833_v17 = vsel %vm2658_vm3, %v1745_v16, 0  ;;  %v1755_v19 = vld [vmem:[%s2655_s6 + $0xc] sm:$0xf]  ;;  %v2100_v23 = vld [vmem:[%s2654_s5] ss:$0 sm:$0xff] }
  0x10   : > { %v1984_v6 = vld [vmem:[%s293_s14] sm:$0xff]   ;;  %v1985_v7 = vld [vmem:[%s293_s14 + $0x8] sm:$0xff]   ;;  %v1986_v8 = vld [vmem:[%s293_s14 + $0x10] sm:$0xff]   ;;  %v2103_v24 = vadd.s32 16, %v2095_v21  ;;  %v2106_v25 = vadd.s32 24, %v2095_v21  ;;  %v2109_v26 = vadd.s32 8, %v2095_v21 }
  0x11   : > { %1850 = vmatpush3.bf16.msra.mxu0 %v1982_v1  ;;  %1853 = vmatprep.mubr.msk.bf16.mxu0 %vm363_vm1, %v1984_v6  ;;  %v1988_v9 = vld [vmem:[%s288_s17] sm:$0xff]   ;;  %v1989_v10 = vld [vmem:[%s288_s17 + $0x8] sm:$0xff]   ;;  %v1987_v11 = vld [vmem:[%s293_s14 + $0x18] sm:$0xff]   ;;  %v2115_v32 = vadd.s32 32, %v2095_v21  ;;  %vm2662_vm5 = vcmask 64512   ;;  %v2667_v41 = vmov 0 }
  0x12   : > { %1851 = vmatprep.subr.bf16.mxu0 %v1983_v4  ;;  %1863 = vmatprep.mubr.msk.bf16.mxu1 %vm481_vm2, %v1988_v9  ;;  %v1990_v12 = vld [vmem:[%s288_s17 + $0x10] sm:$0xff]   ;;  %v1991_v13 = vld [vmem:[%s288_s17 + $0x18] sm:$0xff]   ;;  %v589_v31 = vand.u32 7, %v2103_v24  ;;  %v596_v35 = vand.u32 7, %v2106_v25  ;;  %v582_v36 = vand.u32 7, %v2109_v26  ;;  %v2000_v43 = vmov 0.0  }
  0x13   : > { %1864 = vmatmul.mubr.msk.bf16.vlgmr.msra.gmra.mxu1 %vm481_vm2, %v1989_v10  ;;  %v2135_v45 = vadd.s32 40, %v2095_v21  ;;  %v603_v46 = vand.u32 7, %v2115_v32  ;;  %v575_v53 = vand.u32 7, %v2095_v21  ;;  %v2156_v54 = vadd.s32 48, %v2095_v21  ;;  %v2180_v1 = vld [vmem:[%s2655_s6 + $0x14] sm:$0xf] }
  0x14   : > { %1867 = vmatprep.mubr.msk.bf16.mxu1 %vm481_vm2, %v1990_v12  ;;  %1872 = vmatpush3.bf16.msra.mxu1 %v739_v15  ;;  %vm2128_vm6 = vcmp.ge.s32.totalorder %v589_v31, 1  ;;  %vm2144_vm7 = vcmp.ge.s32.totalorder %v596_v35, 1  ;;  %vm2148_vm8 = vcmp.ge.s32.totalorder %v582_v36, 1  ;;  %v2159_v55 = vadd.s32 56, %v2095_v21  ;;  %s1789_s19 = sshll.u32 %s2757_s25, 6 }
  0x15   : > { %1852 = vmatpush3.bf16.msra.mxu0 %v1983_v4  ;;  %1965 = vmatprep.subr.msk.bf16.mxu1 %vm2658_vm3, %v2087_v18  ;;  %v2668_v41 = vsel %vm2128_vm6, 4294967295, %v2667_v41  ;;  %vm2660_vm9 = vcmask 1046528   ;;  %v1066_v59 = vsel %vm2658_vm3, %v1755_v19, 0  ;;  %v610_v63 = vand.u32 7, %v2135_v45  ;;  %s2626_s25 = scalar_lea.vmem %s2656_s7, %s1789_s19 }
  0x16   : > { %1964 = vmatprep.subr.msk.bf16.mxu0 %vm2658_vm3, %v1745_v16  ;;  %vm2173_vm10 = vcmp.ge.s32.totalorder %v603_v46, 1  ;;  %vm2199_vm11 = vcmp.ge.s32.totalorder %v575_v53, 1  ;;  %v617_v10 = vand.u32 7, %v2156_v54  ;;  %vm2207_vm12 = vcmp.lt.s32.totalorder %v575_v53, 7 }
  0x17   : > { %v2677_v14 = vmov 0  ;;  %vm2226_vm13 = vcmp.ge.s32.totalorder %v610_v63, 1  ;;  %vm2243_vm15 = vcmp.lt.s32.totalorder %v582_v36, 7 }
  0x18   : > { %1854 = vmatmul.mubr.msk.bf16.vlgmr.msra.gmra.mxu0 %vm363_vm1, %v1985_v7  ;;  %v2678_v14 = vsel %vm2207_vm12, 4294967295, %v2677_v14  ;;  %vm2239_vm14 = vcmp.ge.s32.totalorder %v617_v10, 1 }
  0x19   : > { %1857 = vmatprep.mubr.msk.bf16.mxu0 %vm363_vm1, %v1986_v8  ;;  %1882 = vmatpush3.bf16.msra.mxu0 %v833_v17 }
  0x1a   : > { %1966 = vmatprep.subr.msk.bf16.mxu0 %vm2658_vm3, %v1755_v19  ;;  %v961_v19 = vsel %vm2658_vm3, %v2087_v18, 0 }
  0x1b   : > { %1868 = vmatmul.mubr.msk.bf16.gmra.mxu1 %vm481_vm2, %v1991_v13  ;;  %v624_v13 = vand.u32 7, %v2159_v55  ;;  %vm2324_vm2 = vcmp.lt.s32.totalorder %v589_v31, 7  ;;  %v1264_v31 = vsel %vm2658_vm3, %v2180_v1, 0 }
  0x1d   : > { %vm2260_vm0 = vcmp.ge.s32.totalorder %v624_v13, 1 }
  0x20   : > { %1858 = vmatmul.mubr.msk.bf16.gmra.mxu0 %vm363_vm1, %v1987_v11  ;;  %vm2318_vm1 = vcmp.lt.s32.totalorder %v596_v35, 7 }
  0xd8   : > { %v1855_v22 = vpop.f32.mrf.mxu0 }
  0xd9   : > { %v423_v28 = vadd.f32 %v1855_v22, %v2100_v23  ;;  %v2679_v22 = vmov 0 }
  0xda   : > { %v414_v27 = vpop.f32.mrf.mxu0  ;;  %v2680_v22 = vsel %vm2226_vm13, 4294967295, %v2679_v22 }
  0xdb   : > { %v415_v29 = vadd.f32 %v2100_v23, %v414_v27  ;;  %v2122_v38 = vmax.f32 %v423_v28, 0.0 }
  0xdc   : > { %v1856_v30 = vpop.f32.mrf.mxu0 }
  0xdd   : > { %v2117_v33 = vmax.f32 %v415_v29, 0.0  ;;  %v426_v34 = vadd.f32 %v1856_v30, %v2100_v23  ;;  %v694_v56 = vrot.slane %v2122_v38, 7  ;;  %v2683_v29 = vmov 0  ;;  %v1760_v30 = vld [vmem:[%s2655_s6 + $0x10] sm:$0xf] }
  0xde   : > { %v417_v37 = vpop.f32.mrf.mxu0  ;;  %v2684_v29 = vsel %vm2243_vm15, 4294967295, %v2683_v29 }
  0xdf   : > { %v691_v39 = vrot.slane %v2117_v33, 7  ;;  %v418_v40 = vadd.f32 %v2100_v23, %v417_v37  ;;  %v814_v44 = vpack.c.bf16 %v2117_v33, %v2000_v43  ;;  %v2138_v47 = vmax.f32 %v426_v34, 0.0 }
  0xe0   : > { %v1859_v42 = vpop.f32.mrf.mxu0  ;;  %v910_v27 = vrot.slane %v2117_v33, 1 }
  0xe1   : > { %v2140_v48 = vmax.f32 %v418_v40, 0.0  ;;  %1883 = vmatprep.mubr.msk.bf16.mxu0 %vm2662_vm5, %v814_v44  ;;  %v711_v52 = vsel %vm2657_vm4, 0.0, %v691_v39  ;;  %v439_v60 = vadd.f32 %v1859_v42, %v2100_v23  ;;  %v696_v2 = vrot.slane %v2138_v47, 7 }
  0xe2   : > { %v430_v51 = vpop.f32.mrf.mxu0  ;;  %v712_v5 = vsel %vm2148_vm8, %v711_v52, 0.0 }
  0xe3   : > { %v692_v57 = vrot.slane %v2140_v48, 7  ;;  %v2165_v58 = vpack.c.bf16 %v2122_v38, %v2140_v48  ;;  %v431_v61 = vadd.f32 %v2100_v23, %v430_v51  ;;  %v2213_v15 = vmax.f32 %v439_v60, 0.0 }
  0xe4   : > { %v1860_v62 = vpop.f32.mrf.mxu0  ;;  %v719_v16 = vpack.c.bf16 %v712_v5, %v2000_v43  ;;  %v2231_v26 = vsel %vm2657_vm4, %v694_v56, %v696_v2  ;;  %v911_v34 = vrot.slane %v2140_v48, 1 }
  0xe5   : > { %v2184_v3 = vsel %vm2657_vm4, %v691_v39, %v692_v57  ;;  %v2187_v4 = vsel %vm2657_vm4, %v692_v57, %v694_v56  ;;  %1884 = vmatmul.mubr.msk.bf16.vlgmr.msra.gmra.mxu0 %vm2662_vm5, %v2165_v58  ;;  %v2204_v12 = vmax.f32 %v431_v61, 0.0  ;;  %v442_v37 = vadd.f32 %v1860_v62, %v2100_v23 }
  0xe6   : > { %v713_v6 = vsel %vm2128_vm6, %v2184_v3, 0.0  ;;  %v714_v7 = vsel %vm2144_vm7, %v2187_v4, 0.0  ;;  %v433_v8 = vpop.f32.mrf.mxu0  ;;  %1902 = vmatpush3.bf16.msra.mxu0 %v1066_v59  ;;  %1873 = vmatprep.mubr.msk.bf16.mxu1 %vm2662_vm5, %v719_v16  ;;  %v702_v40 = vrot.slane %v2213_v15, 7  ;;  %v1039_v56 = vsel %vm2199_vm11, %v711_v52, 0.0 }
  0xe7   : > { %v720_v11 = vpack.c.bf16 %v714_v7, %v713_v6  ;;  %1968 = vmatprep.subr.msk.bf16.mxu0 %vm2658_vm3, %v2180_v1  ;;  %v434_v17 = vadd.f32 %v2100_v23, %v433_v8  ;;  %v698_v20 = vrot.slane %v2204_v12, 7  ;;  %v2222_v21 = vpack.c.bf16 %v2204_v12, %v2138_v47 }
  0xe8   : > { %v715_v23 = vsel %vm2173_vm10, %v2231_v26, 0.0  ;;  %v1040_v57 = vsel %vm2148_vm8, %v2184_v3, 0.0  ;;  %v933_v62 = vsel %vm2660_vm9, 0.0, %v910_v27  ;;  %v912_v6 = vsel %vm2660_vm9, %v910_v27, %v911_v34 }
  0xe9   : > { %v2235_v18 = vmax.f32 %v434_v17, 0.0  ;;  %1874 = vmatmul.mubr.msk.bf16.vlgmr.msra.gmra.mxu1 %vm2662_vm5, %v720_v11  ;;  %1887 = vmatprep.mubr.msk.bf16.mxu0 %vm2662_vm5, %v2222_v21  ;;  %v2256_v39 = vsel %vm2657_vm4, %v696_v2, %v698_v20  ;;  %v1047_v59 = vpack.c.bf16 %v1040_v57, %v1039_v56  ;;  %v913_v2 = vrot.slane %v2122_v38, 1 }
  0xea   : > { %1892 = vmatpush3.bf16.msra.mxu1 %v961_v19  ;;  %v716_v44 = vsel %vm2226_vm13, %v2256_v39, 0.0  ;;  %v915_v7 = vrot.slane %v2138_v47, 1  ;;  %v935_v16 = vsel %vm2243_vm15, %v912_v6, 0.0  ;;  %v2305_v17 = vmax.f32 %v442_v37, 0.0 }
  0xeb   : > { %v700_v42 = vrot.slane %v2235_v18, 7  ;;  %v721_v51 = vpack.c.bf16 %v716_v44, %v715_v23  ;;  %v2274_v53 = vpack.c.bf16 %v2213_v15, %v2235_v18  ;;  %1967 = vmatprep.subr.msk.bf16.mxu1 %vm2658_vm3, %v1760_v30  ;;  %v919_v8 = vrot.slane %v2235_v18, 1 }
  0xec   : > { %v934_v19 = vsel %vm2207_vm12, %v933_v62, 0.0  ;;  %v917_v27 = vrot.slane %v2204_v12, 1  ;;  %v2687_v44 = vmov 0  ;;  %v1042_v25 = vsel %vm2144_vm7, %v2231_v26, 0.0 }
  0xed   : > { %v2283_v60 = vsel %vm2657_vm4, %v698_v20, %v700_v42  ;;  %v2286_v61 = vsel %vm2657_vm4, %v700_v42, %v702_v40  ;;  %1877 = vmatprep.mubr.msk.bf16.mxu1 %vm2662_vm5, %v721_v51  ;;  %1888 = vmatmul.mubr.msk.bf16.gmra.mxu0 %vm2662_vm5, %v2274_v53  ;;  %v2310_v20 = vsel %vm2660_vm9, %v911_v34, %v913_v2  ;;  %v1041_v42 = vsel %vm2128_vm6, %v2187_v4, 0.0 }
  0xee   : > { %v717_v52 = vsel %vm2239_vm14, %v2283_v60, 0.0  ;;  %v718_v5 = vsel %vm2260_vm0, %v2286_v61, 0.0  ;;  %1903 = vmatprep.mubr.msk.bf16.mxu0 %vm2662_vm5, %v1047_v59  ;;  %v942_v23 = vpack.c.bf16 %v935_v16, %v934_v19  ;;  %v2688_v44 = vsel %vm2318_vm1, 4294967295, %v2687_v44 }
  0xef   : > { %v722_v11 = vpack.c.bf16 %v718_v5, %v717_v52  ;;  %v1044_v34 = vsel %vm2226_vm13, %v2283_v60, 0.0  ;;  %v2333_v51 = vsel %vm2660_vm9, %v913_v2, %v915_v7  ;;  %v2340_v24 = vsel %vm2660_vm9, %v917_v27, %v919_v8  ;;  %v1775_v5 = vld [vmem:[%s2655_s6 + $0x1c] sm:$0xf] }
  0xf0   : > { %v936_v35 = vsel %vm2324_vm2, %v2310_v20, 0.0  ;;  %v1036_v56 = vrot.slane %v2305_v17, 7  ;;  %v1048_v57 = vpack.c.bf16 %v1042_v25, %v1041_v42  ;;  %v1043_v59 = vsel %vm2173_vm10, %v2256_v39, 0.0  ;;  %v1770_v42 = vld [vmem:[%s2655_s6 + $0x18] sm:$0xf] }
  0xf1   : > { %1878 = vmatmul.mubr.msk.bf16.gmra.mxu1 %vm2662_vm5, %v722_v11  ;;  %v1049_v62 = vpack.c.bf16 %v1044_v34, %v1043_v59  ;;  %vm2353_vm4 = vcmp.lt.s32.totalorder %v603_v46, 7  ;;  %vm2359_vm3 = vcmp.lt.s32.totalorder %v610_v63, 7  ;;  %v2693_v1 = vmov 0 }
  0xf2   : > { %1893 = vmatprep.mubr.msk.bf16.mxu1 %vm2662_vm5, %v942_v23  ;;  %v2694_v1 = vsel %vm2359_vm3, 4294967295, %v2693_v1  ;;  %v2364_v52 = vsel %vm2660_vm9, %v915_v7, %v917_v27  ;;  %v937_v32 = vsel %vm2318_vm1, %v2333_v51, 0.0  ;;  %v939_v45 = vsel %vm2359_vm3, %v2340_v24, 0.0 }
  0xf3   : > { %v943_v46 = vpack.c.bf16 %v937_v32, %v936_v35  ;;  %vm2695_vm6 = vcmask 1043456   ;;  %v921_v7 = vrot.slane %v2213_v15, 1  ;;  %v923_v11 = vrot.slane %v2305_v17, 1 }
  0xf4   : > { %v1160_v63 = vsel %vm2695_vm6, %v1760_v30, 0  ;;  %v938_v16 = vsel %vm2353_vm4, %v2364_v52, 0.0  ;;  %vm2696_vm9 = vcmask 1040384   ;;  %vm2697_vm13 = vmmov %vm2695_vm6  ;;  %v1045_v30 = vsel %vm2239_vm14, %v2286_v61, 0.0 }
  0xf5   : > { %1904 = vmatmul.mubr.msk.bf16.vlgmr.msra.gmra.mxu0 %vm2662_vm5, %v1048_v57  ;;  %v2386_v19 = vsel %vm2696_vm9, %v702_v40, %v1036_v56  ;;  %v944_v27 = vpack.c.bf16 %v939_v45, %v938_v16  ;;  %v1237_v23 = vsel %vm2207_vm12, %v912_v6, 0.0  ;;  %v1238_v40 = vsel %vm2243_vm15, %v2310_v20, 0.0 }
  0xf6   : > { %1907 = vmatprep.mubr.msk.bf16.mxu0 %vm2662_vm5, %v1049_v62  ;;  %1922 = vmatpush3.bf16.msra.mxu0 %v1264_v31  ;;  %vm2698_vm6 = vcmask 1046528   ;;  %v1046_v25 = vsel %vm2260_vm0, %v2386_v19, 0.0  ;;  %vm2410_vm9 = vcmp.lt.s32.totalorder %v617_v10, 7  ;;  %v1245_v57 = vpack.c.bf16 %v1238_v40, %v1237_v23 }
  0xf7   : > { %1970 = vmatprep.subr.msk.bf16.mxu0 %vm2697_vm13, %v1775_v5  ;;  %v2402_v34 = vsel %vm2698_vm6, %v919_v8, %v921_v7  ;;  %v1050_v31 = vpack.c.bf16 %v1046_v25, %v1045_v30  ;;  %vm2416_vm13 = vcmp.lt.s32.totalorder %v624_v13, 7  ;;  %v2421_v8 = vsel %vm2698_vm6, %v921_v7, %v923_v11 }
  0xf8   : > { %v940_v54 = vsel %vm2410_vm9, %v2402_v34, 0.0  ;;  %vm2704_vm15 = vcmask 64512   ;;  %v941_v55 = vsel %vm2416_vm13, %v2421_v8, 0.0  ;;  %v1240_v13 = vsel %vm2318_vm1, %v2364_v52, 0.0 }
  0xf9   : > { %1894 = vmatmul.mubr.msk.bf16.vlgmr.msra.gmra.mxu1 %vm2662_vm5, %v943_v46  ;;  %vm2705_vm12 = vmmov %vm2704_vm15  ;;  %v945_v10 = vpack.c.bf16 %v941_v55, %v940_v54  ;;  %v1141_v59 = vpack.c.bf16 %v2140_v48, %v2117_v33  ;;  %v1241_v62 = vsel %vm2353_vm4, %v2340_v24, 0.0  ;;  %v1242_v32 = vsel %vm2359_vm3, %v2402_v34, 0.0 }
  0xfa   : > { %1912 = vmatpush3.bf16.msra.mxu1 %v1160_v63  ;;  %1897 = vmatprep.mubr.msk.bf16.mxu1 %vm2662_vm5, %v944_v27  ;;  %vm2703_vm5 = vcmask 1043456   ;;  %v1239_v45 = vsel %vm2324_vm2, %v2333_v51, 0.0  ;;  %v1247_v33 = vpack.c.bf16 %v1242_v32, %v1241_v62  ;;  %v1142_v7 = vpack.c.bf16 %v2138_v47, %v2122_v38 }
  0xfb   : > { %1969 = vmatprep.subr.msk.bf16.mxu1 %vm2703_vm5, %v1770_v42  ;;  %vm2706_vm5 = vmmov %vm2705_vm12  ;;  %v1246_v46 = vpack.c.bf16 %v1240_v13, %v1239_v45  ;;  %v1143_v27 = vpack.c.bf16 %v2235_v18, %v2204_v12  ;;  %v1341_v47 = vsel %vm2199_vm11, %v2184_v3, 0.0  ;;  %v1342_v12 = vsel %vm2148_vm8, %v2187_v4, 0.0 }
  0xfc   : > { %vm2709_vm6 = vmmov %vm2706_vm5  ;;  %v1144_v18 = vpack.c.bf16 %v2305_v17, %v2213_v15  ;;  %v1344_v9 = vsel %vm2144_vm7, %v2256_v39, 0.0  ;;  %v1345_v50 = vsel %vm2173_vm10, %v2283_v60, 0.0  ;;  %vm2719_vm8 = vnez %v2680_v22 }
  0xfd   : > { %1908 = vmatmul.mubr.msk.bf16.gmra.mxu0 %vm2704_vm15, %v1050_v31  ;;  %vm2708_vm15 = vcmask 1043456   ;;  %vm2711_vm1 = vmmov %vm2709_vm6  ;;  %vm2724_vm10 = vcmask 1040384   ;;  %v1529_v36 = vsel %vm2353_vm4, %v2402_v34, 0.0 }
  0xfe   : > { %1923 = vmatprep.mubr.msk.bf16.mxu0 %vm2705_vm12, %v1245_v57  ;;  %vm2707_vm12 = vmmov %vm2706_vm5  ;;  %v1450_v63 = vsel %vm2708_vm15, %v1775_v5, 0  ;;  %v1243_v5 = vsel %vm2410_vm9, %v2421_v8, 0.0  ;;  %v1340_v0 = vsel %vm2724_vm10, %v1036_v56, 0.0 }
  0xff   : > { %vm2712_vm3 = vmmov %vm2708_vm15  ;;  %v1348_v22 = vsel %vm2260_vm0, %v1340_v0, 0.0  ;;  %vm2732_vm0 = vnez %v2694_v1 }
 0x100   : > { %v1368_v16 = vsel %vm2712_vm3, %v1770_v42, 0  ;;  %vm2714_vm15 = vmmov %vm2711_vm1  ;;  %v1349_v42 = vpack.c.bf16 %v1342_v12, %v1341_v47 }
 0x101   : > { %1898 = vmatmul.mubr.msk.bf16.gmra.mxu1 %vm2706_vm5, %v945_v10  ;;  %vm2710_vm5 = vcmask 1046528   ;;  %vm2718_vm11 = vmmov %vm2711_vm1 }
 0x102   : > { %1913 = vmatprep.mubr.msk.bf16.mxu1 %vm2707_vm12, %v1141_v59  ;;  %v1236_v48 = vsel %vm2710_vm5, %v923_v11, 0.0  ;;  %v1780_v11 = vld [vmem:[%s2655_s6 + $0x20] sm:$0xf]  ;;  %vm2713_vm12 = vmmov %vm2711_vm1 }
 0x103   : > { %v1244_v30 = vsel %vm2416_vm13, %v1236_v48, 0.0  ;;  %vm2715_vm13 = vmmov %vm2711_vm1 }
 0x104   : > { %v1248_v38 = vpack.c.bf16 %v1244_v30, %v1243_v5  ;;  %vm2717_vm5 = vmmov %vm2711_vm1 }
 0x105   : > { %1924 = vmatmul.mubr.msk.bf16.vlgmr.msra.gmra.mxu0 %vm2709_vm6, %v1246_v46  ;;  %vm2716_vm6 = vmmov %vm2711_vm1 }
 0x106   : > { %1927 = vmatprep.mubr.msk.bf16.mxu0 %vm2711_vm1, %v1247_v33  ;;  %1942 = vmatpush3.bf16.msra.mxu0 %v1450_v63  ;;  %vm2722_vm7 = vmmov %vm2712_vm3 }
 0x107   : > { %v1551_v4 = vsel %vm2722_vm7, %v1780_v11, 0 }
 0x109   : > { %1914 = vmatmul.mubr.msk.bf16.vlgmr.msra.gmra.mxu1 %vm2711_vm1, %v1142_v7  ;;  %vm2720_vm1 = vnez %v2668_v41  ;;  %v1443_v41 = vpack.c.bf16 %v2000_v43, %v2305_v17 }
 0x10a   : > { %1932 = vmatpush3.bf16.msra.mxu1 %v1368_v16  ;;  %1917 = vmatprep.mubr.msk.bf16.mxu1 %vm2713_vm12, %v1143_v27  ;;  %v1343_v3 = vsel %vm2720_vm1, %v2231_v26, 0.0  ;;  %vm2721_vm12 = vmmov %vm2717_vm5 }
 0x10b   : > { %1971 = vmatprep.subr.msk.bf16.mxu1 %vm2712_vm3, %v1780_v11  ;;  %v1350_v49 = vpack.c.bf16 %v1344_v9, %v1343_v3  ;;  %vm2723_vm3 = vmmov %vm2717_vm5 }
 0x10c   : > { %vm2733_vm1 = vmmov %vm2723_vm3 }
 0x10d   : > { %1928 = vmatmul.mubr.msk.bf16.gmra.mxu0 %vm2714_vm15, %v1248_v38  ;;  %vm2725_vm15 = vmmov %vm2723_vm3 }
 0x10e   : > { %1943 = vmatprep.mubr.msk.bf16.mxu0 %vm2715_vm13, %v2165_v58  ;;  %v1346_v58 = vsel %vm2719_vm8, %v2286_v61, 0.0  ;;  %vm2726_vm13 = vmmov %vm2723_vm3 }
 0x10f   : > { %v1351_v15 = vpack.c.bf16 %v1346_v58, %v1345_v50  ;;  %vm2730_vm8 = vmmov %vm2723_vm3 }
 0x110   : > { %vm2735_vm4 = vmmov %vm2733_vm1 }
 0x111   : > { %1918 = vmatmul.mubr.msk.bf16.gmra.mxu1 %vm2716_vm6, %v1144_v18  ;;  %vm2727_vm6 = vnez %v2678_v14  ;;  %v1527_v14 = vsel %vm2324_vm2, %v2364_v52, 0.0  ;;  %vm2747_vm2 = vmmov %vm2733_vm1 }
 0x112   : > { %1933 = vmatprep.mubr.msk.bf16.mxu1 %vm2717_vm5, %v1349_v42  ;;  %v1525_v26 = vsel %vm2727_vm6, %v2310_v20, 0.0  ;;  %vm2728_vm5 = vnez %v2684_v29  ;;  %v1530_v29 = vsel %vm2732_vm0, %v2421_v8, 0.0  ;;  %v1531_v20 = vsel %vm2410_vm9, %v1236_v48, 0.0  ;;  %vm2749_vm9 = vmmov %vm2733_vm1 }
 0x113   : > { %v1534_v17 = vpack.c.bf16 %v1530_v29, %v1529_v36  ;;  %vm2750_vm7 = vmmov %vm2733_vm1 }
 0x114   : > { %vm2752_vm10 = vmmov %vm2733_vm1 }
 0x115   : > { %1944 = vmatmul.mubr.msk.bf16.vlgmr.msra.gmra.mxu0 %vm2718_vm11, %v2222_v21  ;;  %v1347_v21 = vsel %vm2239_vm14, %v2386_v19, 0.0  ;;  %vm2729_vm11 = vmmov %vm2723_vm3  ;;  %vm2731_vm14 = vnez %v2688_v44  ;;  %v1535_v44 = vpack.c.bf16 %v2000_v43, %v1531_v20 }
 0x116   : > { %1947 = vmatprep.mubr.msk.bf16.mxu0 %vm2721_vm12, %v2274_v53  ;;  %v1352_v39 = vpack.c.bf16 %v1348_v22, %v1347_v21  ;;  %v1526_v53 = vsel %vm2728_vm5, %v2333_v51, 0.0  ;;  %v1528_v28 = vsel %vm2731_vm14, %v2340_v24, 0.0  ;;  %vm2734_vm12 = vmmov %vm2733_vm1  ;;  %v1865_v51 = vpop.f32.mrf.mxu1 }
 0x117   : > { %v1532_v60 = vpack.c.bf16 %v1526_v53, %v1525_v26  ;;  %v1533_v61 = vpack.c.bf16 %v1528_v28, %v1527_v14  ;;  %vm2755_vm6 = vmmov %vm2733_vm1 }
 0x118   : > { %v531_v37 = vpop.f32.mrf.mxu1 }
 0x119   : > { %1934 = vmatmul.mubr.msk.bf16.vlgmr.msra.gmra.mxu1 %vm2723_vm3, %v1350_v49  ;;  %vm2751_vm3 = vmmov %vm2733_vm1 }
 0x11a   : > { %1952 = vmatpush3.bf16.msra.mxu1 %v1551_v4  ;;  %1937 = vmatprep.mubr.msk.bf16.mxu1 %vm2725_vm15, %v1351_v15  ;;  %v1866_v24 = vpop.f32.mrf.mxu1  ;;  %v1732_v4 = vld [vmem:[%s2652_s3] ss:$0 sm:$0xff]  ;;  %vm2753_vm15 = vmmov %vm2733_vm1 }
 0x11b   : > { %v540_v22 = vadd.f32 %v1865_v51, %v1732_v4  ;;  %v532_v53 = vadd.f32 %v1732_v4, %v531_v37  ;;  %v543_v36 = vadd.f32 %v1866_v24, %v1732_v4 }
 0x11c   : > { %v534_v56 = vpop.f32.mrf.mxu1 }
 0x11d   : > { %1948 = vmatmul.mubr.msk.bf16.gmra.mxu0 %vm2726_vm13, %v1443_v41  ;;  %vm2754_vm13 = vmmov %vm2733_vm1 }
 0x11e   : > { %v1869_v2 = vpop.f32.mrf.mxu1 }
 0x120   : > { %v2537_v52 = vpop.f32.mrf.mxu1 }
 0x121   : > { %1938 = vmatmul.mubr.msk.bf16.gmra.mxu1 %vm2729_vm11, %v1352_v39 }
 0x122   : > { %1953 = vmatprep.mubr.msk.bf16.mxu1 %vm2730_vm8, %v1532_v60  ;;  %v2539_v1 = vpop.f32.mrf.mxu1 }
 0x124   : > { %v2541_v40 = vpop.f32.mrf.mxu1 }
 0x129   : > { %1954 = vmatmul.mubr.msk.bf16.vlgmr.msra.gmra.mxu1 %vm2733_vm1, %v1533_v61 }
 0x12a   : > { %1957 = vmatprep.mubr.msk.bf16.mxu1 %vm2734_vm12, %v1534_v17  ;;  %v535_v17 = vadd.f32 %v1732_v4, %v534_v56 }
 0x131   : > { %1958 = vmatmul.mubr.msk.bf16.gmra.mxu1 %vm2735_vm4, %v1535_v44 }
 0x1a5   : > { %v1885_v19 = vpop.f32.mrf.mxu0 }
 0x1a7   : > { %v869_v23 = vpop.f32.mrf.mxu0 }
 0x1a9   : > { %v2543_v34 = vpop.f32.mrf.mxu0  ;;  %v1875_v25 = vpop.f32.mrf.mxu1 }
 0x1aa   : > { %v808_v60 = vadd.f32 %v1875_v25, %v540_v22 }
 0x1ab   : > { %v2545_v31 = vpop.f32.mrf.mxu0  ;;  %v775_v43 = vpop.f32.mrf.mxu1 }
 0x1ac   : > { %v806_v14 = vadd.f32 %v775_v43, %v532_v53  ;;  %v902_v44 = vadd.f32 %v1885_v19, %v808_v60  ;;  %v559_v53 = vadd.f32 %v2539_v1, %v1732_v4 }
 0x1ad   : > { %v1876_v35 = vpop.f32.mrf.mxu1  ;;  %v2547_v6 = vpop.f32.mrf.mxu0 }
 0x1ae   : > { %v809_v20 = vadd.f32 %v1876_v35, %v543_v36 }
 0x1af   : > { %v778_v8 = vpop.f32.mrf.mxu1  ;;  %v2549_v57 = vpop.f32.mrf.mxu0 }
 0x1b0   : > { %v903_v43 = vadd.f32 %v2543_v34, %v809_v20 }
 0x1b1   : > { %v1879_v54 = vpop.f32.mrf.mxu1  ;;  %v2551_v55 = vpop.f32.mrf.mxu0 }
 0x1b3   : > { %v791_v10 = vpop.f32.mrf.mxu1  ;;  %v2553_v13 = vpop.f32.mrf.mxu0 }
 0x1b5   : > { %v1880_v59 = vpop.f32.mrf.mxu1  ;;  %v1905_v62 = vpop.f32.mrf.mxu0 }
 0x1b7   : > { %v2555_v32 = vpop.f32.mrf.mxu1  ;;  %v2557_v45 = vpop.f32.mrf.mxu0 }
 0x1b9   : > { %v1895_v46 = vpop.f32.mrf.mxu1  ;;  %v2559_v63 = vpop.f32.mrf.mxu0 }
 0x1ba   : > { %v1030_v51 = vadd.f32 %v1895_v46, %v902_v44 }
 0x1bb   : > { %v997_v33 = vpop.f32.mrf.mxu1  ;;  %v2561_v48 = vpop.f32.mrf.mxu0 }
 0x1bc   : > { %v1135_v60 = vadd.f32 %v1905_v62, %v1030_v51 }
 0x1bd   : > { %v1896_v7 = vpop.f32.mrf.mxu1  ;;  %v2563_v16 = vpop.f32.mrf.mxu0 }
 0x1be   : > { %v1031_v35 = vadd.f32 %v1896_v7, %v903_v43 }
 0x1bf   : > { %v1000_v27 = vpop.f32.mrf.mxu1  ;;  %v2565_v5 = vpop.f32.mrf.mxu0 }
 0x1c1   : > { %v1899_v30 = vpop.f32.mrf.mxu1  ;;  %v2567_v11 = vpop.f32.mrf.mxu0 }
 0x1c3   : > { %v1013_v38 = vpop.f32.mrf.mxu1  ;;  %v2569_v47 = vpop.f32.mrf.mxu0 }
 0x1c4   : > { %2736 = vst [vmem:[#allocation2_spill] sm:$0xff] %v2569_v47  ;;  %v556_v47 = vadd.f32 %v1869_v2, %v1732_v4  ;;  %v551_v2 = vadd.f32 %v1732_v4, %v2541_v40 }
 0x1c5   : > { %v2571_v12 = vpop.f32.mrf.mxu1  ;;  %v1925_v18 = vpop.f32.mrf.mxu0 }
 0x1c6   : > { %v812_v22 = vadd.f32 %v1879_v54, %v556_v47  ;;  %v811_v34 = vadd.f32 %v2555_v32, %v551_v2 }
 0x1c7   : > { %v2573_v42 = vpop.f32.mrf.mxu1  ;;  %v2575_v9 = vpop.f32.mrf.mxu0 }
 0x1c8   : > { %v906_v36 = vadd.f32 %v2547_v6, %v812_v22  ;;  %v905_v32 = vadd.f32 %v2553_v13, %v811_v34 }
 0x1c9   : > { %v1915_v50 = vpop.f32.mrf.mxu1  ;;  %v2577_v58 = vpop.f32.mrf.mxu0 }
 0x1ca   : > { %v1229_v54 = vadd.f32 %v1915_v50, %v1135_v60  ;;  %v1034_v7 = vadd.f32 %v1899_v30, %v906_v36 }
 0x1cb   : > { %v1196_v3 = vpop.f32.mrf.mxu1  ;;  %v2579_v49 = vpop.f32.mrf.mxu0 }
 0x1cc   : > { %2737 = vst [vmem:[#allocation3_spill] sm:$0xff] %v2579_v49  ;;  %v900_v49 = vadd.f32 %v869_v23, %v806_v14  ;;  %v1333_v50 = vadd.f32 %v1925_v18, %v1229_v54  ;;  %v1139_v30 = vadd.f32 %v2563_v16, %v1034_v7 }
 0x1cd   : > { %v1916_v15 = vpop.f32.mrf.mxu1  ;;  %v2584_v0 = vpop.f32.mrf.mxu0 }
 0x1ce   : > { %2738 = vst [vmem:[#allocation4_spill] sm:$0xff] %v2584_v0  ;;  %v1028_v24 = vadd.f32 %v997_v33, %v900_v49 }
 0x1cf   : > { %v1199_v41 = vpop.f32.mrf.mxu1  ;;  %v2586_v21 = vpop.f32.mrf.mxu0 }
 0x1d0   : > { %2739 = vst [vmem:[#allocation5_spill] sm:$0xff] %v2586_v21  ;;  %v807_v21 = vadd.f32 %v778_v8, %v535_v17  ;;  %v813_v8 = vadd.f32 %v1880_v59, %v559_v53  ;;  %v1133_v33 = vadd.f32 %v2557_v45, %v1028_v24 }
 0x1d1   : > { %v1919_v26 = vpop.f32.mrf.mxu1  ;;  %v2588_v39 = vpop.f32.mrf.mxu0 }
 0x1d2   : > { %2740 = vst [vmem:[#allocation6_spill] sm:$0xff] %v2588_v39  ;;  %v548_v39 = vadd.f32 %v1732_v4, %v2537_v52  ;;  %v901_v19 = vadd.f32 %v2545_v31, %v807_v21  ;;  %v1227_v47 = vadd.f32 %v1196_v3, %v1133_v33  ;;  %v1136_v31 = vadd.f32 %v2559_v63, %v1031_v35 }
 0x1d3   : > { %v1212_v28 = vpop.f32.mrf.mxu1  ;;  %v2590_v61 = vpop.f32.mrf.mxu0  ;;  %v907_v40 = vadd.f32 %v2551_v55, %v813_v8  ;;  %v1033_v55 = vadd.f32 %v2573_v42, %v905_v32  ;;  %v2743_v42 = vld [vmem:[#allocation2_spill] sm:$0xff] }
 0x1d4   : > { %2741 = vst [vmem:[#allocation7_spill] sm:$0xff] %v2590_v61  ;;  %v810_v61 = vadd.f32 %v791_v10, %v548_v39  ;;  %v1029_v52 = vadd.f32 %v1000_v27, %v901_v19  ;;  %v1230_v27 = vadd.f32 %v1916_v15, %v1136_v31  ;;  %v1331_v63 = vadd.f32 %v2575_v9, %v1227_v47 }
 0x1d5   : > { %v2592_v29 = vpop.f32.mrf.mxu1  ;;  %v1945_v37 = vpop.f32.mrf.mxu0  ;;  %v1035_v45 = vadd.f32 %v2571_v12, %v907_v40  ;;  %v1138_v20 = vadd.f32 %v2743_v42, %v1033_v55 }
 0x1d6   : > { %v904_v1 = vadd.f32 %v2549_v57, %v810_v61  ;;  %v1134_v6 = vadd.f32 %v2561_v48, %v1029_v52  ;;  %v1233_v48 = vadd.f32 %v1919_v26, %v1139_v30  ;;  %v1334_v12 = vadd.f32 %v2577_v58, %v1230_v27  ;;  %v2742_v61 = vld [vmem:[#allocation3_spill] sm:$0xff]  ;;  %v2744_v26 = vld [vmem:[#allocation4_spill] sm:$0xff] }
 0x1d7   : > { %v2594_v0 = vpop.f32.mrf.mxu1  ;;  %v1486_v23 = vpop.f32.mrf.mxu0  ;;  %v1140_v13 = vadd.f32 %v2567_v11, %v1035_v45  ;;  %v2745_v11 = vld [vmem:[#allocation5_spill] sm:$0xff] }
 0x1d8   : > { %v1032_v62 = vadd.f32 %v1013_v38, %v904_v1  ;;  %v1228_v57 = vadd.f32 %v1199_v41, %v1134_v6 }
 0x1d9   : > { %v1935_v25 = vpop.f32.mrf.mxu1  ;;  %v1946_v59 = vpop.f32.mrf.mxu0  ;;  %v1234_v9 = vadd.f32 %v2592_v29, %v1140_v13  ;;  %v2746_v19 = vld [vmem:[#allocation6_spill] sm:$0xff] }
 0x1da   : > { %v1437_v3 = vadd.f32 %v1935_v25, %v1333_v50  ;;  %v1137_v38 = vadd.f32 %v2565_v5, %v1032_v62  ;;  %v1332_v16 = vadd.f32 %v2742_v61, %v1228_v57  ;;  %v1337_v25 = vadd.f32 %v2744_v26, %v1233_v48 }
 0x1db   : > { %v1404_v56 = vpop.f32.mrf.mxu1  ;;  %v1489_v15 = vpop.f32.mrf.mxu0  ;;  %v1338_v60 = vadd.f32 %v2746_v19, %v1234_v9  ;;  %v2748_v52 = vld [vmem:[#allocation7_spill] sm:$0xff] }
 0x1dc   : > { %v1435_v18 = vadd.f32 %v1404_v56, %v1331_v63  ;;  %v1231_v39 = vadd.f32 %v1212_v28, %v1137_v38  ;;  %v1519_v17 = vadd.f32 %v1945_v37, %v1437_v3  ;;  %v1232_v28 = vadd.f32 %v2594_v0, %v1138_v20 }
 0x1dd   : > { %v1936_v46 = vpop.f32.mrf.mxu1  ;;  %v1949_v5 = vpop.f32.mrf.mxu0 }
 0x1de   : > { %v1438_v14 = vadd.f32 %v1936_v46, %v1334_v12  ;;  %v1517_v58 = vadd.f32 %v1486_v23, %v1435_v18  ;;  %v1335_v24 = vadd.f32 %v2745_v11, %v1231_v39  ;;  %v1336_v36 = vadd.f32 %v2748_v52, %v1232_v28 }
 0x1df   : > { %v1407_v10 = vpop.f32.mrf.mxu1  ;;  %v1502_v35 = vpop.f32.mrf.mxu0 }
 0x1e0   : > { %v1436_v51 = vadd.f32 %v1407_v10, %v1332_v16  ;;  %v1520_v56 = vadd.f32 %v1946_v59, %v1438_v14 }
 0x1e1   : > { %v1939_v49 = vpop.f32.mrf.mxu1  ;;  %v1950_v7 = vpop.f32.mrf.mxu0 }
 0x1e2   : > { %v1441_v37 = vadd.f32 %v1939_v49, %v1337_v25  ;;  %v1518_v46 = vadd.f32 %v1489_v15, %v1436_v51 }
 0x1e3   : > { %v1420_v4 = vpop.f32.mrf.mxu1  ;;  %v1505_v45 = vpop.f32.mrf.mxu0 }
 0x1e4   : > { %v1439_v0 = vadd.f32 %v1420_v4, %v1335_v24  ;;  %v1523_v10 = vadd.f32 %v1949_v5, %v1441_v37 }
 0x1e5   : > { %v1940_v21 = vpop.f32.mrf.mxu1 }
 0x1e6   : > { %v1442_v33 = vadd.f32 %v1940_v21, %v1338_v60  ;;  %v1521_v59 = vadd.f32 %v1502_v35, %v1439_v0 }
 0x1e7   : > { %v1423_v41 = vpop.f32.mrf.mxu1 }
 0x1e8   : > { %v1440_v31 = vadd.f32 %v1423_v41, %v1336_v36  ;;  %v1524_v50 = vadd.f32 %v1950_v7, %v1442_v33 }
 0x1e9   : > { %v1955_v44 = vpop.f32.mrf.mxu1 }
 0x1ea   : > { %v1620_v22 = vadd.f32 %v1955_v44, %v1519_v17  ;;  %v1522_v30 = vadd.f32 %v1505_v45, %v1440_v31 }
 0x1eb   : > { %v1587_v29 = vpop.f32.mrf.mxu1 }
 0x1ec   : > { %v1628_v43 = vmax.f32 %v1620_v22, 0.0  ;;  %v1618_v53 = vadd.f32 %v1587_v29, %v1517_v58 }
 0x1ed   : > { %v1956_v2 = vpop.f32.mrf.mxu1 }
 0x1ee   : > { %1636 = vst.msk [vmem:[%s2626_s25 + $0x10] sm:$0xff] %vm2747_vm2, %v1628_v43  ;;  %v1626_v8 = vmax.f32 %v1618_v53, 0.0  ;;  %v1621_v23 = vadd.f32 %v1956_v2, %v1520_v56 }
 0x1ef   : > { %v1590_v54 = vpop.f32.mrf.mxu1 }
 0x1f0   : > { %1634 = vst.msk [vmem:[%s2626_s25] sm:$0xff] %vm2749_vm9, %v1626_v8  ;;  %v1629_v34 = vmax.f32 %v1621_v23, 0.0  ;;  %v1619_v1 = vadd.f32 %v1590_v54, %v1518_v46 }
 0x1f1   : > { %v1959_v47 = vpop.f32.mrf.mxu1 }
 0x1f2   : > { %1637 = vst.msk [vmem:[%s2626_s25 + $0x18] sm:$0xff] %vm2750_vm7, %v1629_v34  ;;  %v1627_v62 = vmax.f32 %v1619_v1, 0.0  ;;  %v1624_v40 = vadd.f32 %v1959_v47, %v1523_v10 }
 0x1f3   : > { %v1603_v49 = vpop.f32.mrf.mxu1 }
 0x1f4   : > { %1635 = vst.msk [vmem:[%s2626_s25 + $0x8] sm:$0xff] %vm2751_vm3, %v1627_v62  ;;  %v1632_v27 = vmax.f32 %v1624_v40, 0.0  ;;  %v1622_v6 = vadd.f32 %v1603_v49, %v1521_v59 }
 0x1f5   : > { %v1960_v32 = vpop.f32.mrf.mxu1 }
 0x1f6   : > { %1640 = vst.msk [vmem:[%s2626_s25 + $0x30] sm:$0xff] %vm2752_vm10, %v1632_v27  ;;  %v1630_v4 = vmax.f32 %v1622_v6, 0.0  ;;  %v1625_v57 = vadd.f32 %v1960_v32, %v1524_v50 }
 0x1f7   : > { %v1606_v3 = vpop.f32.mrf.mxu1 }
 0x1f8   : > { %1638 = vst.msk [vmem:[%s2626_s25 + $0x20] sm:$0xff] %vm2753_vm15, %v1630_v4  ;;  %v1633_v63 = vmax.f32 %v1625_v57, 0.0  ;;  %v1623_v55 = vadd.f32 %v1606_v3, %v1522_v30 }
 0x1fa   : > { %1641 = vst.msk [vmem:[%s2626_s25 + $0x38] sm:$0xff] %vm2754_vm13, %v1633_v63  ;;  %v1631_v38 = vmax.f32 %v1623_v55, 0.0 }
 0x1fc   : > { %1639 = vst.msk [vmem:[%s2626_s25 + $0x28] sm:$0xff] %vm2755_vm6, %v1631_v38 }
 0x1fd PF: > { %s17_s24 = sadd.s32 1, %s1998_s24  }
 0x1fe   : > { %p14_p4 = scmp.ge.s32.totalorder %s17_s24, 4  }
 0x200   :  { %16 = sbr.rel (!%p14_p4) target bundleno = 1 (0x1), region = 89 }

</bundles_post_ra>
